<compile_context>
chip_gen: v5e
topology: v5e:2x2
jax: 0.10.0
libtpu: 0.0.40
codegen_flags: <defaults>
</compile_context>

<pallas_src>
import functools

import jax
import jax.numpy as jnp
from jax import lax
from jax.experimental import pallas as pl
from jax.experimental.pallas import tpu as pltpu


def _cross_attn_kernel(x_ref, c_ref, wqt_ref, wkvt_ref, wot_ref, bo_ref, o_ref,
                       *, heads, dim_head, scale):
    f32 = jnp.float32
    cdt = x_ref.dtype                      # MXU operand dtype follows model dtype
    inner = heads * dim_head

    x = x_ref[0]                           # (tq, Dq)
    c = c_ref[0]                           # (Nk, Dc)

    # Fused Q projection over all heads: one lane-dense (tq, inner) matmul.
    q = jnp.dot(x, wqt_ref[...], preferred_element_type=f32)        # (tq, inner)
    q = (q * scale).astype(cdt)            # fold softmax scale into q (cheaper tile)

    # Fused K/V projection: single (Nk, 2*inner) matmul, one weight DMA stream.
    kv = jnp.dot(c, wkvt_ref[...], preferred_element_type=f32).astype(cdt)
    k = kv[:, :inner]                      # (Nk, inner)
    v = kv[:, inner:]                      # (Nk, inner)

    # Per-head attention; heads unrolled in-kernel (no per-head grid steps).
    attn_heads = []
    for h in range(heads):
        lo = h * dim_head
        hi = lo + dim_head
        qh = q[:, lo:hi]                   # (tq, dh)
        kh = k[:, lo:hi]                   # (Nk, dh)
        vh = v[:, lo:hi]                   # (Nk, dh)

        # q @ k.T without materializing a transpose (MXU consumes the rhs transposed).
        s = lax.dot_general(qh, kh, (((1,), (1,)), ((), ())),
                            preferred_element_type=f32)             # (tq, Nk), f32
        s = s - jnp.max(s, axis=-1, keepdims=True)
        p = jnp.exp(s)
        p = p * pl.reciprocal(jnp.sum(p, axis=-1, keepdims=True), approx=True)
        attn_heads.append(jnp.dot(p.astype(cdt), vh,
                                  preferred_element_type=f32))      # (tq, dh)

    attn = jnp.concatenate(attn_heads, axis=-1).astype(cdt)         # (tq, inner)

    # Single lane-dense output projection + bias, written once (no accumulation).
    out = jnp.dot(attn, wot_ref[...], preferred_element_type=f32)   # (tq, Dq)
    out = out + bo_ref[...].astype(f32)                             # broadcast (1, Dq)
    o_ref[0] = out.astype(o_ref.dtype)


def cross_attention_pallas(x, context, wq, wk, wv, wo, bo, *, heads, dim_head,
                           q_tile=None, vmem_limit_bytes=None):
    B, Nq, Dq = x.shape
    _, Nk, Dc = context.shape
    inner = heads * dim_head
    assert wq.shape == (inner, Dq)
    assert wk.shape == (inner, Dc) and wv.shape == (inner, Dc)
    assert wo.shape == (Dq, inner) and bo.shape == (Dq,)

    scale = dim_head ** -0.5

    # Pre-transpose / fuse weights in the wrapper: no in-kernel transposes and a
    # single projection matmul (one DMA stream) for K and V together.
    wq_t = wq.T                                    # (Dq, inner)
    wkv_t = jnp.concatenate([wk, wv], axis=0).T    # (Dc, 2*inner)
    wo_t = wo.T                                    # (inner, Dq)
    bo2 = bo.reshape(1, Dq)

    # Query-tile axis: bounds VMEM residency (v7x has 64 MiB) and gives megacore a
    # parallel axis beyond batch at SD scale.  Tile must divide Nq and be a
    # multiple of 8 (or equal Nq).
    if q_tile is None:
        q_tile = Nq
        for cand in (1024, 512, 256, 128, 64, 32, 16, 8):
            if cand <= Nq and Nq % cand == 0:
                q_tile = cand
                break
    assert Nq % q_tile == 0

    kernel = functools.partial(_cross_attn_kernel, heads=heads,
                               dim_head=dim_head, scale=scale)

    return pl.pallas_call(
        kernel,
        out_shape=jax.ShapeDtypeStruct((B, Nq, Dq), x.dtype),
        grid_spec=pltpu.PrefetchScalarGridSpec(
            num_scalar_prefetch=0,
            grid=(B, Nq // q_tile),
            in_specs=[
                pl.BlockSpec((1, q_tile, Dq), lambda b, qi: (b, qi, 0)),   # x tile
                pl.BlockSpec((1, Nk, Dc), lambda b, qi: (b, 0, 0)),        # context
                pl.BlockSpec((Dq, inner), lambda b, qi: (0, 0)),           # Wq^T
                pl.BlockSpec((Dc, 2 * inner), lambda b, qi: (0, 0)),       # [Wk;Wv]^T
                pl.BlockSpec((inner, Dq), lambda b, qi: (0, 0)),           # Wo^T
                pl.BlockSpec((1, Dq), lambda b, qi: (0, 0)),               # bias
            ],
            out_specs=pl.BlockSpec((1, q_tile, Dq), lambda b, qi: (b, qi, 0)),
        ),
        compiler_params=pltpu.CompilerParams(
            dimension_semantics=("parallel", "parallel"),
            vmem_limit_bytes=vmem_limit_bytes),
    )(x, context, wq_t, wkv_t, wo_t, bo2)


def cross_attention_ref(x, context, wq, wk, wv, wo, bo, *, heads):
    """Plain-JAX reference mirroring the PyTorch forward exactly."""
    q = x @ wq.T
    k = context @ wk.T
    v = context @ wv.T
    B, Nq, inner = q.shape
    dh = inner // heads

    def to_heads(t):
        Bt, N, _ = t.shape
        return t.reshape(Bt, N, heads, dh).transpose(0, 2, 1, 3).reshape(Bt * heads, N, dh)

    qh, kh, vh = to_heads(q), to_heads(k), to_heads(v)
    s = jnp.einsum('bid,bjd->bij', qh, kh) * (dh ** -0.5)
    p = jax.nn.softmax(s, axis=-1)
    oh = jnp.einsum('bij,bjd->bid', p, vh)
    o = oh.reshape(B, heads, Nq, dh).transpose(0, 2, 1, 3).reshape(B, Nq, inner)
    return o @ wo.T + bo


if __name__ == "__main__":
    # Module config (small, consistent with CrossAttention.__init__)
    query_dim = 32
    cross_attention_dim = 16
    heads = 4
    dim_head = 8
    inner_dim = heads * dim_head

    B, Nq, Nk = 2, 16, 8

    key = jax.random.PRNGKey(0)
    kx, kc, kq, kk, kv, ko, kb = jax.random.split(key, 7)

    x = jax.random.normal(kx, (B, Nq, query_dim), dtype=jnp.float32)
    context = jax.random.normal(kc, (B, Nk, cross_attention_dim), dtype=jnp.float32)

    # Deterministic synthetic parameters (PyTorch Linear layout: (out_features, in_features)).
    wq = jax.random.normal(kq, (inner_dim, query_dim), dtype=jnp.float32) * 0.05
    wk = jax.random.normal(kk, (inner_dim, cross_attention_dim), dtype=jnp.float32) * 0.05
    wv = jax.random.normal(kv, (inner_dim, cross_attention_dim), dtype=jnp.float32) * 0.05
    wo = jax.random.normal(ko, (query_dim, inner_dim), dtype=jnp.float32) * 0.05
    bo = jax.random.normal(kb, (query_dim,), dtype=jnp.float32) * 0.05

    out = cross_attention_pallas(x, context, wq, wk, wv, wo, bo,
                                 heads=heads, dim_head=dim_head)
    out = jax.block_until_ready(out)

    ref = cross_attention_ref(x, context, wq, wk, wv, wo, bo, heads=heads)
    assert out.shape == (B, Nq, query_dim)
    # Tolerance accounts for the EUP approximate-reciprocal softmax denominator.
    assert jnp.allclose(out, ref, rtol=2e-3, atol=2e-3), "mismatch vs reference"

    print("KERNEL_OK")
</pallas_src>

<mosaic_0001>
module attributes {stable_mosaic.version = 11 : i64} {
  func.func @_cross_attn_kernel(%arg0: i32, %arg1: i32, %arg2: memref<1x16x32xf32, #tpu.memory_space<vmem>>, %arg3: memref<1x8x16xf32, #tpu.memory_space<vmem>>, %arg4: memref<32x32xf32, #tpu.memory_space<vmem>>, %arg5: memref<16x64xf32, #tpu.memory_space<vmem>>, %arg6: memref<32x32xf32, #tpu.memory_space<vmem>>, %arg7: memref<1x32xf32, #tpu.memory_space<vmem>>, %arg8: memref<1x16x32xf32, #tpu.memory_space<vmem>>) attributes {dimension_semantics = [#tpu.dimension_semantics<parallel>, #tpu.dimension_semantics<parallel>], iteration_bounds = array<i64: 2, 1>, scalar_prefetch = 0 : i64, scratch_operands = 0 : i64, tpu.core_type = #tpu.core_type<tc>, window_params = [{transform_indices = @transform_0, window_bounds = array<i64: 1, 16, 32>}, {transform_indices = @transform_1, window_bounds = array<i64: 1, 8, 16>}, {pipeline_mode = #tpu.pipeline_mode<synchronous>, transform_indices = @transform_2, window_bounds = array<i64: 32, 32>}, {pipeline_mode = #tpu.pipeline_mode<synchronous>, transform_indices = @transform_3, window_bounds = array<i64: 16, 64>}, {pipeline_mode = #tpu.pipeline_mode<synchronous>, transform_indices = @transform_4, window_bounds = array<i64: 32, 32>}, {pipeline_mode = #tpu.pipeline_mode<synchronous>, transform_indices = @transform_5, window_bounds = array<i64: 1, 32>}, {transform_indices = @transform_6, window_bounds = array<i64: 1, 16, 32>}]} {
    %c0 = arith.constant 0 : index
    %c0_0 = arith.constant 0 : index
    %c0_1 = arith.constant 0 : index
    %0 = vector.load %arg2[%c0, %c0_0, %c0_1] : memref<1x16x32xf32, #tpu.memory_space<vmem>>, vector<1x16x32xf32>
    %1 = vector.shape_cast %0 : vector<1x16x32xf32> to vector<16x32xf32>
    %c0_2 = arith.constant 0 : index
    %c0_3 = arith.constant 0 : index
    %c0_4 = arith.constant 0 : index
    %2 = vector.load %arg3[%c0_2, %c0_3, %c0_4] : memref<1x8x16xf32, #tpu.memory_space<vmem>>, vector<1x8x16xf32>
    %3 = vector.shape_cast %2 : vector<1x8x16xf32> to vector<8x16xf32>
    %c0_5 = arith.constant 0 : index
    %c0_6 = arith.constant 0 : index
    %4 = vector.load %arg4[%c0_5, %c0_6] : memref<32x32xf32, #tpu.memory_space<vmem>>, vector<32x32xf32>
    %cst = arith.constant dense<0.000000e+00> : vector<16x32xf32>
    %5 = tpu.matmul %1, %4, %cst {dimension_numbers = #tpu.dot_dimension_numbers<[1], [0], [0], [1], [0, 0, 1, 1], [], []>} : vector<16x32xf32>, vector<32x32xf32>, vector<16x32xf32> -> vector<16x32xf32>
    %cst_7 = arith.constant 0.353553385 : f32
    %6 = vector.broadcast %cst_7 : f32 to vector<16x32xf32>
    %7 = arith.mulf %5, %6 : vector<16x32xf32>
    %c0_8 = arith.constant 0 : index
    %c0_9 = arith.constant 0 : index
    %8 = vector.load %arg5[%c0_8, %c0_9] : memref<16x64xf32, #tpu.memory_space<vmem>>, vector<16x64xf32>
    %cst_10 = arith.constant dense<0.000000e+00> : vector<8x64xf32>
    %9 = tpu.matmul %3, %8, %cst_10 {dimension_numbers = #tpu.dot_dimension_numbers<[1], [0], [0], [1], [0, 0, 1, 1], [], []>} : vector<8x16xf32>, vector<16x64xf32>, vector<8x64xf32> -> vector<8x64xf32>
    %10 = vector.extract_strided_slice %9 {offsets = [0, 0], sizes = [8, 32], strides = [1, 1]} : vector<8x64xf32> to vector<8x32xf32>
    %11 = vector.extract_strided_slice %9 {offsets = [0, 32], sizes = [8, 32], strides = [1, 1]} : vector<8x64xf32> to vector<8x32xf32>
    %12 = vector.extract_strided_slice %7 {offsets = [0, 0], sizes = [16, 8], strides = [1, 1]} : vector<16x32xf32> to vector<16x8xf32>
    %13 = vector.extract_strided_slice %10 {offsets = [0, 0], sizes = [8, 8], strides = [1, 1]} : vector<8x32xf32> to vector<8x8xf32>
    %14 = vector.extract_strided_slice %11 {offsets = [0, 0], sizes = [8, 8], strides = [1, 1]} : vector<8x32xf32> to vector<8x8xf32>
    %cst_11 = arith.constant dense<0.000000e+00> : vector<16x8xf32>
    %15 = tpu.matmul %12, %13, %cst_11 {dimension_numbers = #tpu.dot_dimension_numbers<[1], [1], [0], [0], [0, 0, 1, 0], [], []>} : vector<16x8xf32>, vector<8x8xf32>, vector<16x8xf32> -> vector<16x8xf32>
    %cst_12 = arith.constant dense<0xFF800000> : vector<16xf32>
    %16 = vector.multi_reduction <maximumf>, %15, %cst_12 [1] : vector<16x8xf32> to vector<16xf32>
    %17 = vector.shape_cast %16 : vector<16xf32> to vector<16x1xf32>
    %18 = vector.broadcast %17 : vector<16x1xf32> to vector<16x8xf32>
    %19 = arith.subf %15, %18 : vector<16x8xf32>
    %20 = math.exp %19 : vector<16x8xf32>
    %cst_13 = arith.constant dense<0.000000e+00> : vector<16xf32>
    %21 = vector.multi_reduction <add>, %20, %cst_13 [1] : vector<16x8xf32> to vector<16xf32>
    %22 = vector.shape_cast %21 : vector<16xf32> to vector<16x1xf32>
    %23 = tpu.reciprocal %22 {approx = true} : vector<16x1xf32> -> vector<16x1xf32>
    %24 = vector.broadcast %23 : vector<16x1xf32> to vector<16x8xf32>
    %25 = arith.mulf %20, %24 : vector<16x8xf32>
    %cst_14 = arith.constant dense<0.000000e+00> : vector<16x8xf32>
    %26 = tpu.matmul %25, %14, %cst_14 {dimension_numbers = #tpu.dot_dimension_numbers<[1], [0], [0], [1], [0, 0, 1, 1], [], []>} : vector<16x8xf32>, vector<8x8xf32>, vector<16x8xf32> -> vector<16x8xf32>
    %27 = vector.extract_strided_slice %7 {offsets = [0, 8], sizes = [16, 8], strides = [1, 1]} : vector<16x32xf32> to vector<16x8xf32>
    %28 = vector.extract_strided_slice %10 {offsets = [0, 8], sizes = [8, 8], strides = [1, 1]} : vector<8x32xf32> to vector<8x8xf32>
    %29 = vector.extract_strided_slice %11 {offsets = [0, 8], sizes = [8, 8], strides = [1, 1]} : vector<8x32xf32> to vector<8x8xf32>
    %cst_15 = arith.constant dense<0.000000e+00> : vector<16x8xf32>
    %30 = tpu.matmul %27, %28, %cst_15 {dimension_numbers = #tpu.dot_dimension_numbers<[1], [1], [0], [0], [0, 0, 1, 0], [], []>} : vector<16x8xf32>, vector<8x8xf32>, vector<16x8xf32> -> vector<16x8xf32>
    %cst_16 = arith.constant dense<0xFF800000> : vector<16xf32>
    %31 = vector.multi_reduction <maximumf>, %30, %cst_16 [1] : vector<16x8xf32> to vector<16xf32>
    %32 = vector.shape_cast %31 : vector<16xf32> to vector<16x1xf32>
    %33 = vector.broadcast %32 : vector<16x1xf32> to vector<16x8xf32>
    %34 = arith.subf %30, %33 : vector<16x8xf32>
    %35 = math.exp %34 : vector<16x8xf32>
    %cst_17 = arith.constant dense<0.000000e+00> : vector<16xf32>
    %36 = vector.multi_reduction <add>, %35, %cst_17 [1] : vector<16x8xf32> to vector<16xf32>
    %37 = vector.shape_cast %36 : vector<16xf32> to vector<16x1xf32>
    %38 = tpu.reciprocal %37 {approx = true} : vector<16x1xf32> -> vector<16x1xf32>
    %39 = vector.broadcast %38 : vector<16x1xf32> to vector<16x8xf32>
    %40 = arith.mulf %35, %39 : vector<16x8xf32>
    %cst_18 = arith.constant dense<0.000000e+00> : vector<16x8xf32>
    %41 = tpu.matmul %40, %29, %cst_18 {dimension_numbers = #tpu.dot_dimension_numbers<[1], [0], [0], [1], [0, 0, 1, 1], [], []>} : vector<16x8xf32>, vector<8x8xf32>, vector<16x8xf32> -> vector<16x8xf32>
    %42 = vector.extract_strided_slice %7 {offsets = [0, 16], sizes = [16, 8], strides = [1, 1]} : vector<16x32xf32> to vector<16x8xf32>
    %43 = vector.extract_strided_slice %10 {offsets = [0, 16], sizes = [8, 8], strides = [1, 1]} : vector<8x32xf32> to vector<8x8xf32>
    %44 = vector.extract_strided_slice %11 {offsets = [0, 16], sizes = [8, 8], strides = [1, 1]} : vector<8x32xf32> to vector<8x8xf32>
    %cst_19 = arith.constant dense<0.000000e+00> : vector<16x8xf32>
    %45 = tpu.matmul %42, %43, %cst_19 {dimension_numbers = #tpu.dot_dimension_numbers<[1], [1], [0], [0], [0, 0, 1, 0], [], []>} : vector<16x8xf32>, vector<8x8xf32>, vector<16x8xf32> -> vector<16x8xf32>
    %cst_20 = arith.constant dense<0xFF800000> : vector<16xf32>
    %46 = vector.multi_reduction <maximumf>, %45, %cst_20 [1] : vector<16x8xf32> to vector<16xf32>
    %47 = vector.shape_cast %46 : vector<16xf32> to vector<16x1xf32>
    %48 = vector.broadcast %47 : vector<16x1xf32> to vector<16x8xf32>
    %49 = arith.subf %45, %48 : vector<16x8xf32>
    %50 = math.exp %49 : vector<16x8xf32>
    %cst_21 = arith.constant dense<0.000000e+00> : vector<16xf32>
    %51 = vector.multi_reduction <add>, %50, %cst_21 [1] : vector<16x8xf32> to vector<16xf32>
    %52 = vector.shape_cast %51 : vector<16xf32> to vector<16x1xf32>
    %53 = tpu.reciprocal %52 {approx = true} : vector<16x1xf32> -> vector<16x1xf32>
    %54 = vector.broadcast %53 : vector<16x1xf32> to vector<16x8xf32>
    %55 = arith.mulf %50, %54 : vector<16x8xf32>
    %cst_22 = arith.constant dense<0.000000e+00> : vector<16x8xf32>
    %56 = tpu.matmul %55, %44, %cst_22 {dimension_numbers = #tpu.dot_dimension_numbers<[1], [0], [0], [1], [0, 0, 1, 1], [], []>} : vector<16x8xf32>, vector<8x8xf32>, vector<16x8xf32> -> vector<16x8xf32>
    %57 = vector.extract_strided_slice %7 {offsets = [0, 24], sizes = [16, 8], strides = [1, 1]} : vector<16x32xf32> to vector<16x8xf32>
    %58 = vector.extract_strided_slice %10 {offsets = [0, 24], sizes = [8, 8], strides = [1, 1]} : vector<8x32xf32> to vector<8x8xf32>
    %59 = vector.extract_strided_slice %11 {offsets = [0, 24], sizes = [8, 8], strides = [1, 1]} : vector<8x32xf32> to vector<8x8xf32>
    %cst_23 = arith.constant dense<0.000000e+00> : vector<16x8xf32>
    %60 = tpu.matmul %57, %58, %cst_23 {dimension_numbers = #tpu.dot_dimension_numbers<[1], [1], [0], [0], [0, 0, 1, 0], [], []>} : vector<16x8xf32>, vector<8x8xf32>, vector<16x8xf32> -> vector<16x8xf32>
    %cst_24 = arith.constant dense<0xFF800000> : vector<16xf32>
    %61 = vector.multi_reduction <maximumf>, %60, %cst_24 [1] : vector<16x8xf32> to vector<16xf32>
    %62 = vector.shape_cast %61 : vector<16xf32> to vector<16x1xf32>
    %63 = vector.broadcast %62 : vector<16x1xf32> to vector<16x8xf32>
    %64 = arith.subf %60, %63 : vector<16x8xf32>
    %65 = math.exp %64 : vector<16x8xf32>
    %cst_25 = arith.constant dense<0.000000e+00> : vector<16xf32>
    %66 = vector.multi_reduction <add>, %65, %cst_25 [1] : vector<16x8xf32> to vector<16xf32>
    %67 = vector.shape_cast %66 : vector<16xf32> to vector<16x1xf32>
    %68 = tpu.reciprocal %67 {approx = true} : vector<16x1xf32> -> vector<16x1xf32>
    %69 = vector.broadcast %68 : vector<16x1xf32> to vector<16x8xf32>
    %70 = arith.mulf %65, %69 : vector<16x8xf32>
    %cst_26 = arith.constant dense<0.000000e+00> : vector<16x8xf32>
    %71 = tpu.matmul %70, %59, %cst_26 {dimension_numbers = #tpu.dot_dimension_numbers<[1], [0], [0], [1], [0, 0, 1, 1], [], []>} : vector<16x8xf32>, vector<8x8xf32>, vector<16x8xf32> -> vector<16x8xf32>
    %72 = tpu.concatenate %26, %41, %56, %71 in 1 : vector<16x8xf32>, vector<16x8xf32>, vector<16x8xf32>, vector<16x8xf32> -> vector<16x32xf32>
    %c0_27 = arith.constant 0 : index
    %c0_28 = arith.constant 0 : index
    %73 = vector.load %arg6[%c0_27, %c0_28] : memref<32x32xf32, #tpu.memory_space<vmem>>, vector<32x32xf32>
    %cst_29 = arith.constant dense<0.000000e+00> : vector<16x32xf32>
    %74 = tpu.matmul %72, %73, %cst_29 {dimension_numbers = #tpu.dot_dimension_numbers<[1], [0], [0], [1], [0, 0, 1, 1], [], []>} : vector<16x32xf32>, vector<32x32xf32>, vector<16x32xf32> -> vector<16x32xf32>
    %c0_30 = arith.constant 0 : index
    %c0_31 = arith.constant 0 : index
    %75 = vector.load %arg7[%c0_30, %c0_31] : memref<1x32xf32, #tpu.memory_space<vmem>>, vector<1x32xf32>
    %76 = vector.broadcast %75 : vector<1x32xf32> to vector<16x32xf32>
    %77 = arith.addf %74, %76 : vector<16x32xf32>
    %c0_32 = arith.constant 0 : index
    %c0_33 = arith.constant 0 : index
    %c0_34 = arith.constant 0 : index
    %78 = vector.load %arg8[%c0_32, %c0_33, %c0_34] : memref<1x16x32xf32, #tpu.memory_space<vmem>>, vector<1x16x32xf32>
    %79 = vector.shape_cast %78 : vector<1x16x32xf32> to vector<16x32xf32>
    %80 = vector.shape_cast %77 : vector<16x32xf32> to vector<1x16x32xf32>
    tpu.vector_store %arg8[%c0_32, %c0_33, %c0_34], %80 {strides = array<i32>} : memref<1x16x32xf32, #tpu.memory_space<vmem>>, vector<1x16x32xf32>,
    return
  }
  func.func @transform_0(%arg0: i32, %arg1: i32) -> (i32, i32, i32) {
    %c0_i32 = arith.constant 0 : i32
    %c0_i32_0 = arith.constant 0 : i32
    return %arg0, %arg1, %c0_i32 : i32, i32, i32
  }
  func.func @transform_1(%arg0: i32, %arg1: i32) -> (i32, i32, i32) {
    %c0_i32 = arith.constant 0 : i32
    %c0_i32_0 = arith.constant 0 : i32
    %c0_i32_1 = arith.constant 0 : i32
    return %arg0, %c0_i32, %c0_i32_0 : i32, i32, i32
  }
  func.func @transform_2(%arg0: i32, %arg1: i32) -> (i32, i32) {
    %c0_i32 = arith.constant 0 : i32
    %c0_i32_0 = arith.constant 0 : i32
    %c0_i32_1 = arith.constant 0 : i32
    return %c0_i32, %c0_i32_0 : i32, i32
  }
  func.func @transform_3(%arg0: i32, %arg1: i32) -> (i32, i32) {
    %c0_i32 = arith.constant 0 : i32
    %c0_i32_0 = arith.constant 0 : i32
    %c0_i32_1 = arith.constant 0 : i32
    return %c0_i32, %c0_i32_0 : i32, i32
  }
  func.func @transform_4(%arg0: i32, %arg1: i32) -> (i32, i32) {
    %c0_i32 = arith.constant 0 : i32
    %c0_i32_0 = arith.constant 0 : i32
    %c0_i32_1 = arith.constant 0 : i32
    return %c0_i32, %c0_i32_0 : i32, i32
  }
  func.func @transform_5(%arg0: i32, %arg1: i32) -> (i32, i32) {
    %c0_i32 = arith.constant 0 : i32
    %c0_i32_0 = arith.constant 0 : i32
    %c0_i32_1 = arith.constant 0 : i32
    return %c0_i32, %c0_i32_0 : i32, i32
  }
  func.func @transform_6(%arg0: i32, %arg1: i32) -> (i32, i32, i32) {
    %c0_i32 = arith.constant 0 : i32
    %c0_i32_0 = arith.constant 0 : i32
    return %arg0, %arg1, %c0_i32 : i32, i32, i32
  }
}

</mosaic_0001>

<bundles_post_ra>
// kernel: tpu_custom_call.1
= control target key start
LH: loop header
LB: loop body
LE: loop exit
PB: predicated region body
PF: predicated region fallthrough
CT: control target
= control target key end

     0   :  { %s1787_s0 = inlined_call_operand.hbm [shape: f32[2,16,32], index: 0, kind: input, shape index: {}]   ;;  %s1788_s1 = inlined_call_operand.hbm [shape: f32[2,8,16], index: 1, kind: input, shape index: {}]   ;;  %s1789_s2 = inlined_call_operand.hbm [shape: f32[32,32], index: 2, kind: input, shape index: {}]   ;;  %s1790_s3 = inlined_call_operand.hbm [shape: f32[16,64], index: 3, kind: input, shape index: {}]   ;;  %s1791_s4 = inlined_call_operand.hbm [shape: f32[32,32], index: 4, kind: input, shape index: {}]   ;;  %s1792_s5 = inlined_call_operand.vmem [shape: f32[1,32], index: 5, kind: input, shape index: {}]   ;;  %s1793_s6 = inlined_call_operand.hbm [shape: f32[2,16,32], index: 6, kind: output, shape index: {}]  }
   0x1   :  { %1799 = sst [smem:[#allocation21_spill]] %s1789_s2 }
   0x2   :  { %1800 = sst [smem:[#allocation22_spill]] %s1790_s3 }
   0x3   :  { %1801 = sst [smem:[#allocation23_spill]] %s1791_s4 }
   0x4   :  { %11 = vsyncpa [#allocation3], 0 }
   0x5   :  { %13 = vsyncpa [#allocation3 + $0x1], 0 }
   0x6   :  { %14 = vsyncpa [#allocation6], 0 }
   0x7   :  { %16 = vsyncpa [#allocation6 + $0x1], 0 }
   0x8   :  { %17 = vsyncpa [#allocation9], 0 }
   0x9   :  { %18 = vsyncpa [#allocation4], 0 }
   0xa   :  { %20 = vsyncpa [#allocation4 + $0x1], 0  ;;  %s1518_s21 = smov 0   ;;  %s1520_s22 = smov 0  }
   0xb   :  { %s1522_s23 = smov 0   ;;  %s1524_s24 = smov 0  }
   0xc   :  { %s1526_s25 = smov 0   ;;  %s1528_s26 = smov 0  }
   0xd LB: > { %1802 = sst [smem:[#allocation17_spill]] %s1453_s23  ;;  %s1549_s27 = sadd.s32 4294967295, %s1465_s26   ;;  %s1465_s26 = sphi %s1528_s26, %s26_s26   ;;  %s1461_s25 = sphi %s1526_s25, %s1824_s25   ;;  %s1457_s24 = sphi %s1524_s24, %s1823_s24   ;;  %s1453_s23 = sphi %s1522_s23, %s1819_s23   ;;  %s1449_s22 = sphi %s1520_s22, %s1822_s22   ;;  %s1445_s21 = sphi %s1518_s21, %s1821_s21  }
   0xe   : > { %s1026_s28 = sadd.s32 4294967294, %s1465_s26   ;;  %p60_p0 = scmp.ne.s32.totalorder %s1449_s22, %s1445_s21 }
   0xf   : > { %p61_p1 = scmp.eq.s32.totalorder %s1549_s27, 0  ;;  %p196_p2 = scmp.eq.s32.totalorder %s1549_s27, 1 }
  0x10   : > { %p202_p3 = scmp.eq.s32.totalorder %s1026_s28, 1  ;;  %p1027_p5 = scmp.ge.s32.totalorder %s1465_s26, 1 }
  0x11   : > { %p1558_p4 = por %p61_p1, %p60_p0  ;;  %p209_p7 = scmp.lt.s32.totalorder %s1465_s26, 3 }
  0x12   : > { %p1563_p6 = por %p202_p3, %p60_p0  ;;  %s1806_s2 = sld [smem:[#allocation21_spill]] }
  0x13   : > { %p1571_p8 = pnand %p1027_p5, %p209_p7  ;;  %s1467_s11 = smov [#allocation7]  }
  0x14   : > { %s1804_s30 = scalar_select %p1563_p6, 1, 0 }
  0x15   : > { %p1095_p9 = pneg %p1571_p8  ;;  %s222_s12 = sshll.u32 %s1467_s11, 4  ;;  %s223_s12 = int_to_ptr.vmem [resolvable:$true] %s222_s12 }
  0x16   : > { %1805 = sst [smem:[#allocation18_spill]] %s1804_s30  ;;  %p1031_p11 = scmp.ge.s32.totalorder %s1465_s26, 2 }
  0x17   : > { %p1579_p10 = pnand %p1095_p9, %p61_p1  ;;  %s1809_s3 = sld [smem:[#allocation22_spill]] }
  0x18   : > { %s220_s9 = sshll.u32 %s1806_s2, 4  ;;  %s1794_s17 = smov 128   ;;  %s221_s9 = int_to_ptr.hbm [resolvable:$true] %s220_s9 }
  0x19   : > { %s1795_s18 = smov 8   ;;  %s1470_s19 = smov [#allocation8]  }
  0x1a   : > { %1098 = dma.hbm_to_vmem [thread:$0]  (!%p1579_p10), %s221_s9, 512, %s223_s12, [#allocation6], %s1794_s17, %s1794_s17, %s1795_s18  }
  0x1b   : > { %s236_s20 = sshll.u32 %s1470_s19, 4  ;;  %s1810_s4 = sld [smem:[#allocation23_spill]]  ;;  %s237_s20 = int_to_ptr.vmem [resolvable:$true] %s236_s20 }
  0x1c   : > { %s1471_s11 = smov [#allocation10]   ;;  %s38_s9 = sadd.s32 1, %s1461_s25 }
  0x1d   : > { %s234_s16 = sshll.u32 %s1809_s3, 4  ;;  %s250_s14 = sshll.u32 %s1471_s11, 4  ;;  %s235_s16 = int_to_ptr.hbm [resolvable:$true] %s234_s16  ;;  %s251_s14 = int_to_ptr.vmem [resolvable:$true] %s250_s14 }
  0x1e   : > { %1101 = dma.hbm_to_vmem [thread:$0]  (!%p1579_p10), %s235_s16, 256, %s237_s20, [#allocation9], %s1794_s17, %s1794_s17, %s1795_s18  }
  0x1f   : > { %p40_p12 = scmp.ge.s32.totalorder %s38_s9, 2  ;;  %s47_s12 = sadd.s32 1, %s1453_s23 }
  0x20   : > { %p54_p13 = scmp.ne.s32.totalorder %s1453_s23, %s1449_s22  ;;  %p55_p0 = scmp.eq.s32.totalorder %s1465_s26, 0 }
  0x21   : > { %s248_s8 = sshll.u32 %s1810_s4, 4  ;;  %s1826_s9 = smov (%p40_p12, %s38_s9), 0  ;;  %s249_s8 = int_to_ptr.hbm [resolvable:$true] %s248_s8 }
  0x22   : > { %1104 = dma.hbm_to_vmem [thread:$0]  (!%p1579_p10), %s249_s8, 512, %s251_s14, [#allocation9], %s1794_s17, %s1794_s17, %s1795_s18  }
  0x23   : > { %1811 = sst [smem:[#allocation19_spill]] %s1826_s9  ;;  %p1612_p3 = por %p55_p0, %p54_p13 }
  0x24   : > { %p1618_p5 = por %p196_p2, %p54_p13  ;;  %s42_s16 = ssub.s32 %s1461_s25, %s1826_s9 }
  0x25   : > { %p1119_p7 = scmp.lt.s32.totalorder %s1465_s26, 2  ;;  %p45_p9 = scmp.eq.s32.totalorder %s42_s16, 0 }
  0x26   : > { %s267_s19 = sand.u32 1, %s1453_s23   ;;  %s1074_s7 = sshll.u32 %s1461_s25, 4 }
  0x27   : > { %s1032_s20 = sshll.u32 %s267_s19, 4  ;;  %s278_s14 = scalar_lea.hbm %s1787_s0, %s1074_s7 }
  0x28   : > { %s1627_s28 = scalar_select %p45_p9, %s1453_s23, %s47_s12  }
  0x29   : > { %s271_s17 = scalar_lea.vmem [#allocation2], %s1032_s20  ;;  %s279_s2 = sshll.u32 %s278_s14, 4  ;;  %s280_s2 = int_to_ptr.hbm [resolvable:$true] %s279_s2 }
  0x2a   : > { %1814 = sst [smem:[#allocation20_spill]] %s1627_s28  ;;  %s281_s18 = sshll.u32 %s271_s17, 4  ;;  %s282_s18 = int_to_ptr.vmem [resolvable:$true] %s281_s18 }
  0x2b   : > { %p1106_p2 = pnand %p1119_p7, %p1612_p3  ;;  %s291_s3 = sand.u32 1, %s1465_s26  }
  0x2c   : > { %s1035_s4 = sshll.u32 %s267_s19, 3  ;;  %s268_s16 = scalar_lea.sflag [#allocation3], %s267_s19 }
  0x2d   : > { %s1815_s9 = smov 8   ;;  %s1816_s30 = smov 128  }
  0x2e   : > { %1108 = dma.hbm_to_vmem [thread:$0]  (!%p1106_p2), %s280_s2, 256, %s282_s18, %s268_s16, %s1816_s30, %s1816_s30, %s1815_s9  }
  0x2f   : > { %s1036_s12 = sshll.u32 %s1461_s25, 3  ;;  %s295_s7 = scalar_lea.vmem [#allocation5], %s1035_s4 }
  0x30   : > { %s299_s8 = scalar_lea.hbm %s1788_s1, %s1036_s12  ;;  %s303_s20 = sshll.u32 %s295_s7, 4  ;;  %s304_s20 = int_to_ptr.vmem [resolvable:$true] %s303_s20 }
  0x31   : > { %s301_s17 = sshll.u32 %s299_s8, 4  ;;  %s292_s11 = scalar_lea.sflag [#allocation6], %s291_s3  ;;  %s302_s17 = int_to_ptr.hbm [resolvable:$true] %s301_s17 }
  0x32   : > { %1111 = dma.hbm_to_vmem [thread:$0]  (!%p1106_p2), %s302_s17, 128, %s304_s20, %s292_s11  }
  0x33   : > { %312 = sbr.rel (%p1571_p8) target bundleno = 1130 (0x46a), region = 44  ;;  %s1646_s15 = sand.u32 (!%p1571_p8), 1, %s1449_s22  }
  0x34   : > { %s1038_s2 = sshll.u32 (!%p1571_p8), %s1646_s15, 4  ;;  %s315_s23 = scalar_lea.sflag (!%p1571_p8), [#allocation3], %s1646_s15 }
  0x35   : > { %s1652_s4 = scalar_lea.vmem (!%p1571_p8), [#allocation2], %s1038_s2 }
  0x38   : > { %1424 = dma.done.wait (%p1558_p4), %s315_s23, 256  }
  0x39   : > { %1426 = vsyncadd (%p1558_p4), %s315_s23, 4294967040  ;;  %s324_s3 = sand.u32 1, %s1549_s27   ;;  %s1039_s30 = sshll.u32 %s1646_s15, 3 }
  0x3a   : > { %s325_s10 = scalar_lea.sflag [#allocation6], %s324_s3  ;;  %s328_s18 = scalar_lea.vmem [#allocation5], %s1039_s30 }
  0x3b   : > { %1428 = dma.done.wait (%p1558_p4), %s325_s10, 128  }
  0x3c   : > { %1430 = vsyncadd (%p1558_p4), %s325_s10, 4294967168 }
  0x3d   : > { %1432 = dma.done.wait (%p61_p1), [#allocation6], 512  }
  0x3e   : > { %1434 = vsyncadd (%p61_p1), [#allocation6], 4294966784 }
  0x3f   : > { %1436 = dma.done.wait (%p61_p1), [#allocation9], 768  }
  0x40   : > { %1438 = vsyncadd (%p61_p1), [#allocation9], 4294966528  ;;  %v386_v0 = vld [vmem:[#allocation7 + $0x18] sm:$0xff]  ;;  %v420_v1 = vld [vmem:[#allocation8 + $0x8] sm:$0xff]  ;;  %vm421_vm0 = vcmask 130048   ;;  %vm387_vm1 = vcmask 261120  }
  0x41   : > { %v385_v2 = vld [vmem:[#allocation7 + $0x10] sm:$0xff]  ;;  %406 = vmatpush.msra.mxu0 %v386_v0  ;;  %439 = vmatpush.msra.mxu1 %v420_v1  ;;  %v419_v3 = vld [vmem:[#allocation8] sm:$0xff]  ;;  %v384_v5 = vld [vmem:[#allocation7 + $0x8] sm:$0xff]  ;;  %vm445_vm2 = vcmask 64512   ;;  %s1472_s27 = smov 104   ;;  %s1473_s29 = smov 120  }
  0x42   : > { %v382_v4 = vld [vmem:[%s328_s18] sm:$0xff]  ;;  %v383_v6 = vld [vmem:[#allocation7] sm:$0xff]  ;;  %v381_v8 = vld [vmem:[%s1652_s4 + $0x8] sm:$0xff]  ;;  %s1474_s9 = smov 112   ;;  %s1475_s19 = smov 72   ;;  %vm827_vm3 = vcmask 195584  }
  0x43   : > { %407 = vmatpush.msra.mxu0 %v385_v2  ;;  %440 = vmatpush.msra.mxu1 %v419_v3  ;;  %v380_v7 = vld [vmem:[%s1652_s4] sm:$0xff]  ;;  %s1476_s28 = smov 96   ;;  %s1477_s14 = smov 88  }
  0x44   : > { %1046 = vmatmul.msk.f32.vlgmr.msra.gmra.mxu1 %vm421_vm0, %v382_v4  ;;  %s1478_s16 = smov 80   ;;  %s1479_s12 = smov 8  }
  0x45   : > { %408 = vmatpush.msra.mxu0 %v384_v5  ;;  %s1480_s8 = smov 16   ;;  %s1481_s7 = smov 24  }
  0x46   : > { %s377_s11 = scalar_lea.vmem [#allocation11], %s1038_s2  ;;  %s1075_s23 = sshll.u32 %s1457_s24, 4 }
  0x47   : > { %409 = vmatpush.msra.mxu0 %v383_v6  ;;  %s883_s30 = scalar_lea.hbm %s1793_s6, %s1075_s23  ;;  %s884_s10 = sshll.u32 %s377_s11, 4  ;;  %s885_s10 = int_to_ptr.vmem [resolvable:$true] %s884_s10 }
  0x48   : > { %1044 = vmatmul.msk.f32.vlgmr.msra.gmra.mxu0 %vm387_vm1, %v380_v7  ;;  %s886_s18 = sshll.u32 %s883_s30, 4  ;;  %s887_s18 = int_to_ptr.hbm [resolvable:$true] %s886_s18 }
  0x50   : > { %1045 = vmatmul.msk.f32.gmra.mxu0 %vm387_vm1, %v381_v8 }
  0xc1   : > { %v1677_v9 = vpop.f32.mrf.mxu1 }
  0xc2   : > { %714 = vrot.lane.b32.xlu2 %v1677_v9, %s1472_s27  ;;  %536 = vrot.lane.b32.xlu0 %v1677_v9, %s1473_s29 }
  0xc3   : > { %1047 = vmatpush.xpose.msk.msrb.mxu0 %vm445_vm2, %v1677_v9  ;;  %1076 = vmatpush.xpose.msk.msra.mxu2 %vm445_vm2, %v1677_v9 }
  0xc5   : > { %v411_v10 = vpop.f32.mrf.mxu0 }
  0xc6   : > { %v417_v11 = vmul.f32 0.35355338, %v411_v10 }
  0xc8   : > { %1048 = vmatmul.msk.f32.vlgmr.msrb.gmra.mxu0 %vm445_vm2, %v417_v11 }
  0xca   : > { %621 = vrot.lane.b32.xlu2 %v417_v11, %s1474_s9  ;;  %532 = vrot.lane.b32.xlu0 %v417_v11, %s1473_s29 }
  0xcd   : > { %v414_v12 = vpop.f32.mrf.mxu0 }
  0xce   : > { %v418_v13 = vmul.f32 0.35355338, %v414_v12 }
  0xd0   : > { %534 = vrot.lane.b32.xlu1 %v418_v13, %s1473_s29  ;;  %1049 = vmatmul.msk.f32.vlgmr.msra.gmra.mxu2 %vm445_vm2, %v418_v13  ;;  %s1385_s29 = sshra.s32 %s887_s18, 4  ;;  %s1386_s29 = int_to_ptr.hbm [resolvable:$true] %s1385_s29 }
  0xd1   : > { %s1387_s2 = scalar_lea.hbm %s1386_s29, 16  ;;  %p1392_p10 = scmp.lt.s32.totalorder %s1386_s29, %s1793_s6 }
  0xd2   : > { %710 = vrot.lane.b32.xlu0 %v417_v11, %s1472_s27  ;;  %712 = vrot.lane.b32.xlu2 %v418_v13, %s1472_s27  ;;  %s870_s27 = scalar_lea.sflag [#allocation4], %s1646_s15  ;;  %p1388_p1 = scmp.ne.s32.totalorder %s1386_s29, %s1387_s2 }
  0xd4   : > { %p1389_p4 = pnand %p1388_p1, %p1618_p5 }
  0xd6   : > { %p1390_p8 = pneg %p1389_p4 }
  0xd8   : > { %625 = vrot.lane.b32.xlu1 %v1677_v9, %s1474_s9 }
  0xe0   : > { %623 = vrot.lane.b32.xlu1 %v418_v13, %s1474_s9 }
 0x11c   : > { %v715_v15 = vpop.permute.xlu2 %714 }
 0x124   : > { %v622_v20 = vpop.permute.xlu2 %621 }
 0x12c   : > { %v713_v24 = vpop.permute.xlu2 %712 }
 0x134   : > { %v537_v14 = vpop.permute.xlu0 %536 }
 0x135   : > { %1052 = vmatpush.xpose.msk.msrb.mxu1 %vm445_vm2, %v537_v14 }
 0x139   : > { %1062 = vmatpush.xpose.msk.msra.mxu1 %vm445_vm2, %v715_v15 }
 0x13c   : > { %v533_v16 = vpop.permute.xlu0 %532 }
 0x13d   : > { %1053 = vmatmul.msk.f32.vlgmr.msrb.gmra.mxu1 %vm445_vm2, %v533_v16 }
 0x142   : > { %v535_v17 = vpop.permute.xlu1 %534 }
 0x144   : > { %v711_v22 = vpop.permute.xlu0 %710 }
 0x145   : > { %v472_v18 = vpop.f32.mrf.mxu0  ;;  %1054 = vmatmul.msk.f32.gmra.mxu1 %vm445_vm2, %v535_v17 }
 0x146   : > { %v478_v19 = vsel %vm445_vm2, %v472_v18, -inf }
 0x147   : > { %479 = vmax.xlane.f32.xlu0 %v478_v19 }
 0x14a   : > { %v626_v21 = vpop.permute.xlu1 %625 }
 0x14b   : > { %1057 = vmatpush.xpose.msk.msrb.mxu2 %vm445_vm2, %v626_v21 }
 0x14d   : > { %1063 = vmatmul.msk.f32.vlgmr.msra.gmra.mxu1 %vm445_vm2, %v711_v22 }
 0x14e   : > { %1058 = vmatmul.msk.f32.vlgmr.msrb.gmra.mxu2 %vm445_vm2, %v622_v20 }
 0x152   : > { %v624_v26 = vpop.permute.xlu1 %623 }
 0x153   : > { %v475_v23 = vpop.f32.mrf.mxu2 }
 0x154   : > { %v481_v25 = vsel %vm445_vm2, %v475_v23, -inf }
 0x155   : > { %1064 = vmatmul.msk.f32.gmra.mxu1 %vm445_vm2, %v713_v24  ;;  %482 = vmax.xlane.f32.xlu1 %v481_v25 }
 0x156   : > { %1059 = vmatmul.msk.f32.gmra.mxu2 %vm445_vm2, %v624_v26 }
 0x1ba   : > { %v561_v27 = vpop.f32.mrf.mxu1  ;;  %v480_v31 = vpop.xlane.xlu0 %479 }
 0x1bb   : > { %v567_v28 = vsel %vm445_vm2, %v561_v27, -inf  ;;  %v484_v33 = vsub.f32 %v472_v18, %v480_v31 }
 0x1bc   : > { %568 = vmax.xlane.f32.xlu2 %v567_v28 }
 0x1bd   : > { %v486_v36 = vmul.f32 1.442695, %v484_v33 }
 0x1bf   : > { %1189 = vpow2.f32 %v486_v36 }
 0x1c2   : > { %v564_v29 = vpop.f32.mrf.mxu1 }
 0x1c3   : > { %v570_v30 = vsel %vm445_vm2, %v564_v29, -inf }
 0x1c4   : > { %571 = vmax.xlane.f32.xlu2 %v570_v30 }
 0x1c5   : > { %v1190_v42 = vpop.eup %1189 }
 0x1c6   : > { %v490_v46 = vsel %vm445_vm2, %v1190_v42, 0.0 }
 0x1c8   : > { %v483_v32 = vpop.xlane.xlu1 %482 }
 0x1c9   : > { %v485_v34 = vsub.f32 %v475_v23, %v483_v32 }
 0x1ca   : > { %v739_v35 = vpop.f32.mrf.mxu1 }
 0x1cb   : > { %v488_v37 = vmul.f32 1.442695, %v485_v34  ;;  %v745_v48 = vsel %vm445_vm2, %v739_v35, -inf }
 0x1cd   : > { %1191 = vpow2.f32 %v488_v37 }
 0x1d1   : > { %v650_v38 = vpop.f32.mrf.mxu2 }
 0x1d2   : > { %v742_v39 = vpop.f32.mrf.mxu1  ;;  %v656_v40 = vsel %vm445_vm2, %v650_v38, -inf }
 0x1d3   : > { %657 = vmax.xlane.f32.xlu1 %v656_v40  ;;  %v748_v41 = vsel %vm445_vm2, %v742_v39, -inf  ;;  %v1703_v43 = vpop.eup %1191 }
 0x1d4   : > { %749 = vmax.xlane.f32.xlu2 %v748_v41  ;;  %v493_v47 = vsel %vm445_vm2, %v1703_v43, 0.0 }
 0x1d9   : > { %v653_v44 = vpop.f32.mrf.mxu2 }
 0x1da   : > { %v659_v45 = vsel %vm445_vm2, %v653_v44, -inf }
 0x1db   : > { %660 = vmax.xlane.f32.xlu0 %v659_v45  ;;  %491 = vadd.xlane.f32.xlu1 %v490_v46 }
 0x1dc   : > { %494 = vadd.xlane.f32.xlu2 %v493_v47 }
 0x1e3   : > { %746 = vmax.xlane.f32.xlu0 %v745_v48 }
 0x1f4   : > { %767 = vrot.lane.b32.xlu2 %v1677_v9, %s1475_s19  ;;  %s1391_s19 = scalar_lea.hbm %s1793_s6, 32 }
 0x1f5   : > { %p1393_p12 = scmp.lt.s32.totalorder %s1391_s19, %s1387_s2 }
 0x1f7   : > { %500 = vrot.lane.b32.xlu0 %v1677_v9, %s1476_s28  ;;  %p1394_p13 = por %p1393_p12, %p1392_p10 }
 0x1f9   : > { %p1395_p0 = pnand %p1394_p13, %p1390_p8 }
 0x22f   : > { %v569_v49 = vpop.xlane.xlu2 %568 }
 0x230   : > { %v573_v50 = vsub.f32 %v561_v27, %v569_v49 }
 0x232   : > { %v575_v51 = vmul.f32 1.442695, %v573_v50 }
 0x234   : > { %1193 = vpow2.f32 %v575_v51  ;;  %v833_v51 = vld [vmem:[#allocation10 + $0x18] sm:$0xff] }
 0x235   : > { %856 = vmatpush.msra.mxu2 %v833_v51 }
 0x237   : > { %v572_v52 = vpop.xlane.xlu2 %571 }
 0x238   : > { %v574_v53 = vsub.f32 %v564_v29, %v572_v52  ;;  %v832_v52 = vld [vmem:[#allocation10 + $0x10] sm:$0xff] }
 0x239   : > { %857 = vmatpush.msra.mxu2 %v832_v52 }
 0x23a   : > { %v1194_v54 = vpop.eup %1193  ;;  %v577_v55 = vmul.f32 1.442695, %v574_v53  ;;  %v831_v53 = vld [vmem:[#allocation10 + $0x8] sm:$0xff] }
 0x23b   : > { %v579_v56 = vsel %vm445_vm2, %v1194_v54, 0.0  ;;  %858 = vmatpush.msra.mxu2 %v831_v53 }
 0x23c   : > { %1195 = vpow2.f32 %v577_v55  ;;  %580 = vadd.xlane.f32.xlu1 %v579_v56 }
 0x242   : > { %v1196_v57 = vpop.eup %1195 }
 0x243   : > { %v582_v58 = vsel %vm445_vm2, %v1196_v57, 0.0 }
 0x244   : > { %583 = vadd.xlane.f32.xlu2 %v582_v58 }
 0x246   : > { %v658_v59 = vpop.xlane.xlu1 %657 }
 0x247   : > { %v662_v60 = vsub.f32 %v650_v38, %v658_v59  ;;  %v750_v1 = vpop.xlane.xlu2 %749 }
 0x248   : > { %v752_v4 = vsub.f32 %v742_v39, %v750_v1 }
 0x249   : > { %v664_v61 = vmul.f32 1.442695, %v662_v60 }
 0x24a   : > { %v755_v6 = vmul.f32 1.442695, %v752_v4 }
 0x24b   : > { %1197 = vpow2.f32 %v664_v61 }
 0x24e   : > { %v661_v62 = vpop.xlane.xlu0 %660  ;;  %v492_v7 = vpop.xlane.xlu1 %491 }
 0x24f   : > { %v495_v11 = vpop.xlane.xlu2 %494  ;;  %v663_v17 = vsub.f32 %v653_v44, %v661_v62 }
 0x251   : > { %v1714_v63 = vpop.eup %1197  ;;  %v666_v19 = vmul.f32 1.442695, %v663_v17 }
 0x252   : > { %v668_v0 = vsel %vm445_vm2, %v1714_v63, 0.0 }
 0x253   : > { %669 = vadd.xlane.f32.xlu0 %v668_v0 }
 0x255   : > { %589 = vrot.lane.b32.xlu1 %v1677_v9, %s1477_s14 }
 0x256   : > { %v747_v2 = vpop.xlane.xlu0 %746 }
 0x257   : > { %v751_v3 = vsub.f32 %v739_v35, %v747_v2  ;;  %v768_v23 = vpop.permute.xlu2 %767 }
 0x259   : > { %v753_v5 = vmul.f32 1.442695, %v751_v3  ;;  %v1188_v3 = vld [vmem:[%s1792_s5] ss:$0 sm:$0xff] }
 0x25b   : > { %1199 = vpow2.f32 %v753_v5 }
 0x25c   : > { %1201 = vrcp.f32 %v492_v7 }
 0x25d   : > { %1203 = vpow2.f32 %v755_v6 }
 0x25e   : > { %1205 = vrcp.f32 %v495_v11 }
 0x25f   : > { %1207 = vpow2.f32 %v666_v19 }
 0x261   : > { %v1200_v8 = vpop.eup %1199 }
 0x262   : > { %v757_v10 = vsel %vm445_vm2, %v1200_v8, 0.0  ;;  %v1202_v12 = vpop.eup %1201 }
 0x263   : > { %758 = vadd.xlane.f32.xlu2 %v757_v10  ;;  %v1204_v13 = vpop.eup %1203  ;;  %v498_v15 = vmul.f32 %v1202_v12, %v1190_v42 }
 0x264   : > { %v760_v16 = vsel %vm445_vm2, %v1204_v13, 0.0  ;;  %v1206_v18 = vpop.eup %1205 }
 0x265   : > { %v499_v20 = vmul.f32 %v1206_v18, %v1703_v43  ;;  %v1208_v21 = vpop.eup %1207 }
 0x266   : > { %v671_v22 = vsel %vm445_vm2, %v1208_v21, 0.0 }
 0x269   : > { %v501_v14 = vpop.permute.xlu0 %500 }
 0x26a   : > { %524 = vmatpush.msra.mxu3 %v501_v14 }
 0x26b   : > { %761 = vadd.xlane.f32.xlu2 %v760_v16  ;;  %1050 = vmatmul.msk.f32.vlgmr.msra.gmra.mxu3 %vm445_vm2, %v498_v15 }
 0x273   : > { %1051 = vmatmul.msk.f32.gmra.mxu3 %vm445_vm2, %v499_v20 }
 0x27f   : > { %672 = vadd.xlane.f32.xlu1 %v671_v22 }
 0x283   : > { %678 = vrot.lane.b32.xlu2 %v1677_v9, %s1478_s16 }
 0x2af   : > { %v581_v24 = vpop.xlane.xlu1 %580 }
 0x2b0   : > { %1209 = vrcp.f32 %v581_v24 }
 0x2b6   : > { %v1210_v26 = vpop.eup %1209 }
 0x2b7   : > { %v584_v25 = vpop.xlane.xlu2 %583  ;;  %v587_v28 = vmul.f32 %v1210_v26, %v1194_v54  ;;  %v830_v54 = vld [vmem:[#allocation10] sm:$0xff] }
 0x2b8   : > { %1211 = vrcp.f32 %v584_v25  ;;  %859 = vmatpush.msra.mxu2 %v830_v54 }
 0x2be   : > { %v1212_v29 = vpop.eup %1211 }
 0x2bf   : > { %v588_v30 = vmul.f32 %v1212_v29, %v1196_v57 }
 0x2c6   : > { %v670_v32 = vpop.xlane.xlu0 %669 }
 0x2c7   : > { %v590_v27 = vpop.permute.xlu1 %589 }
 0x2c8   : > { %613 = vmatpush.msrb.mxu3 %v590_v27 }
 0x2c9   : > { %1055 = vmatmul.msk.f32.vlgmr.msrb.gmra.mxu3 %vm445_vm2, %v587_v28 }
 0x2ca   : > { %791 = vmatpush.msra.mxu3 %v768_v23 }
 0x2d1   : > { %1056 = vmatmul.msk.f32.gmra.mxu3 %vm445_vm2, %v588_v30 }
 0x2d6   : > { %v759_v31 = vpop.xlane.xlu2 %758 }
 0x2d7   : > { %1213 = vrcp.f32 %v759_v31 }
 0x2d8   : > { %1215 = vrcp.f32 %v670_v32 }
 0x2dd   : > { %v1214_v9 = vpop.eup %1213 }
 0x2de   : > { %v765_v33 = vmul.f32 %v1214_v9, %v1200_v8  ;;  %v762_v34 = vpop.xlane.xlu2 %761  ;;  %v1216_v35 = vpop.eup %1215 }
 0x2df   : > { %1217 = vrcp.f32 %v762_v34  ;;  %v676_v37 = vmul.f32 %v1216_v35, %v1714_v63 }
 0x2e0   : > { %1065 = vmatmul.msk.f32.vlgmr.msra.gmra.mxu3 %vm445_vm2, %v765_v33 }
 0x2e5   : > { %v1218_v36 = vpop.eup %1217 }
 0x2e6   : > { %v679_v38 = vpop.permute.xlu2 %678  ;;  %v766_v39 = vmul.f32 %v1218_v36, %v1204_v13 }
 0x2e7   : > { %702 = vmatpush.msra.mxu0 %v679_v38 }
 0x2e8   : > { %1060 = vmatmul.msk.f32.vlgmr.msra.gmra.mxu0 %vm445_vm2, %v676_v37  ;;  %1066 = vmatmul.msk.f32.gmra.mxu3 %vm445_vm2, %v766_v39 }
 0x2ee   : > { %v526_v43 = vpop.f32.mrf.mxu3 }
 0x2f2   : > { %v673_v40 = vpop.xlane.xlu1 %672 }
 0x2f3   : > { %1219 = vrcp.f32 %v673_v40 }
 0x2f6   : > { %v529_v44 = vpop.f32.mrf.mxu3 }
 0x2f9   : > { %v1220_v41 = vpop.eup %1219 }
 0x2fa   : > { %v677_v42 = vmul.f32 %v1220_v41, %v1208_v21 }
 0x2fc   : > { %1061 = vmatmul.msk.f32.gmra.mxu0 %vm445_vm2, %v677_v42 }
 0x34c   : > { %v615_v45 = vpop.f32.mrf.mxu3 }
 0x34d   : > { %801 = vrot.lane.b32.xlu0 %v615_v45, %s1479_s12 }
 0x354   : > { %v618_v46 = vpop.f32.mrf.mxu3 }
 0x355   : > { %803 = vrot.lane.b32.xlu1 %v618_v46, %s1479_s12 }
 0x363   : > { %v793_v47 = vpop.f32.mrf.mxu3 }
 0x365   : > { %v704_v48 = vpop.f32.mrf.mxu0 }
 0x366   : > { %809 = vrot.lane.b32.xlu2 %v704_v48, %s1480_s8 }
 0x36b   : > { %v796_v49 = vpop.f32.mrf.mxu3 }
 0x36c   : > { %819 = vrot.lane.b32.xlu0 %v796_v49, %s1481_s7 }
 0x36e   : > { %817 = vrot.lane.b32.xlu2 %v793_v47, %s1481_s7 }
 0x379   : > { %v707_v50 = vpop.f32.mrf.mxu0 }
 0x37a   : > { %811 = vrot.lane.b32.xlu2 %v707_v50, %s1480_s8 }
 0x3bf   : > { %v802_v56 = vpop.permute.xlu0 %801 }
 0x3c0   : > { %v810_v55 = vpop.permute.xlu2 %809  ;;  %v823_v57 = vsel %vm445_vm2, %v526_v43, %v802_v56 }
 0x3c1   : > { %v825_v58 = vsel %vm421_vm0, %v823_v57, %v810_v55 }
 0x3c7   : > { %v804_v61 = vpop.permute.xlu1 %803 }
 0x3c8   : > { %v818_v59 = vpop.permute.xlu2 %817  ;;  %v824_v63 = vsel %vm445_vm2, %v529_v44, %v804_v61 }
 0x3c9   : > { %v828_v60 = vsel %vm827_vm3, %v825_v58, %v818_v59 }
 0x3ca   : > { %1067 = vmatmul.msk.f32.vlgmr.msra.gmra.mxu2 %vm387_vm1, %v828_v60 }
 0x3d4   : > { %v812_v62 = vpop.permute.xlu2 %811 }
 0x3d5   : > { %v826_v0 = vsel %vm421_vm0, %v824_v63, %v812_v62 }
 0x3de   : > { %v820_v1 = vpop.permute.xlu0 %819 }
 0x3df   : > { %v829_v2 = vsel %vm827_vm3, %v826_v0, %v820_v1 }
 0x3e0   : > { %1068 = vmatmul.msk.f32.gmra.mxu2 %vm387_vm1, %v829_v2 }
 0x44d   : > { %v861_v4 = vpop.f32.mrf.mxu2 }
 0x44e   : > { %v862_v5 = vadd.f32 %v1188_v3, %v861_v4 }
 0x450   : > { %867 = vst.msk [vmem:[%s377_s11] sm:$0xff] %vm387_vm1, %v862_v5 }
 0x463   : > { %v864_v6 = vpop.f32.mrf.mxu2 }
 0x464   : > { %v865_v7 = vadd.f32 %v1188_v3, %v864_v6 }
 0x466   : > { %868 = vst.msk [vmem:[%s377_s11 + $0x8] sm:$0xff] %vm387_vm1, %v865_v7 }
 0x467   : > { %1398 = shalt.err (!%p1395_p0)
}
 0x468   : > { %s1482_s15 = smov 128  }
 0x469   : > { %1093 = dma.vmem_to_hbm [thread:$0]  (%p1618_p5), %s885_s10, 256, %s887_s18, %s870_s27, %s1482_s15, %s1482_s15, %s1479_s12  }
 0x46a PF: > { %s901_s8 = sand.u32 1, %s1445_s21   ;;  %p1113_p3 = pnand %p1031_p11, %p1563_p6 }
 0x46b   : > { %s902_s7 = scalar_lea.sflag [#allocation4], %s901_s8 }
 0x46c   : > { %p1114_p7 = pneg %p1113_p3 }
 0x46e   : > { %1440 = dma.done.wait (%p1114_p7), %s902_s7, 256  }
 0x46f   : > { %1442 = vsyncadd (%p1114_p7), %s902_s7, 4294967040  ;;  %s26_s26 = sadd.s32 1, %s1465_s26   ;;  %s1818_s20 = sld [smem:[#allocation17_spill]] }
 0x470   : > { %p23_p9 = scmp.ge.s32.totalorder %s26_s26, 4   ;;  %s1819_s23 = sld [smem:[#allocation20_spill]] }
 0x471   : > { %s1820_s13 = sld [smem:[#allocation19_spill]]  ;;  %s1821_s21 = smov %s1449_s22 }
 0x472   : > { %s1823_s24 = smov %s1461_s25 }
 0x473   :  { %25 = sbr.rel (!%p23_p9) target bundleno = 13 (0xd), region = 114 }
 0x475   : > { %s1822_s22 = smov %s1818_s20 }
 0x477   : > { %s1824_s25 = smov %s1820_s13 }
 0x478   :  { %908 = vsyncpa [#allocation3], 1 }
 0x479   :  { %910 = vsyncpa [#allocation3 + $0x1], 1 }
 0x47a   :  { %911 = vsyncpa [#allocation6], 1 }
 0x47b   :  { %913 = vsyncpa [#allocation6 + $0x1], 1 }
 0x47c   :  { %914 = vsyncpa [#allocation9], 1 }
 0x47d   :  { %915 = vsyncpa [#allocation4], 1 }
 0x47e   :  { %917 = vsyncpa [#allocation4 + $0x1], 1 }

</bundles_post_ra>
